<compile_context>
chip_gen: v7x
topology: tpu7x:2x2x1
jax: 0.10.0
libtpu: 0.0.40
codegen_flags: <defaults>
</compile_context>

<pallas_src>
import jax
import jax.numpy as jnp
from jax.experimental import pallas as pl
from jax.experimental.pallas import tpu as pltpu

D1 = 512    # fc1 output features
D2 = 64     # fc2 output features
D2P = 128   # lane-dense padded fc2 width (multiple of 128 lanes)


def _round_up(x, m):
    return ((x + m - 1) // m) * m


def _hw_info():
    """Returns (vmem_capacity_bytes, is_v7x) with conservative fallbacks."""
    vmem_cap = 64 << 20  # conservative (v7x) if the query fails
    try:
        info = pltpu.get_tpu_info()
        vmem_cap = int(getattr(info, "vmem_capacity_bytes", vmem_cap))
    except Exception:
        pass
    vmem_cap = max(vmem_cap, 32 << 20)
    is_v7 = False
    try:
        is_v7 = "v7" in jax.devices()[0].device_kind.lower()
    except Exception:
        pass
    return vmem_cap, is_v7


# ----------------------------------------------------------------------------
# Kernels
# ----------------------------------------------------------------------------
def _extra2_single_kernel(x_ref, w1_ref, b1_ref, w2_ref, b2_ref, o_ref):
    """Single-shot K: whole w1 resident in VMEM. Grid = (batch_tiles,)."""
    # Layer 1 on the MXU, f32 accumulation; bias + ReLU in f32.
    h = jnp.dot(x_ref[...], w1_ref[...], preferred_element_type=jnp.float32)
    h = jnp.maximum(h + b1_ref[...], 0.0)
    # Layer 2 + bias + ReLU; lane-dense (128-wide) unmasked store.
    o = jnp.dot(h.astype(w2_ref.dtype), w2_ref[...],
                preferred_element_type=jnp.float32)
    o_ref[...] = jnp.maximum(o + b2_ref[...], 0.0).astype(o_ref.dtype)


def _extra2_ksplit_kernel(x_ref, w1_ref, b1_ref, w2_ref, b2_ref, o_ref,
                          acc_ref):
    """K-split for very large h_dim. Grid = (batch_tiles, k_tiles)."""
    k = pl.program_id(1)

    @pl.when(k == 0)
    def _():
        # Fold b1 into the accumulator init (saves a (tm,512) f32 add later).
        acc_ref[...] = jnp.broadcast_to(b1_ref[...], acc_ref.shape
                                        ).astype(jnp.float32)

    acc_ref[...] += jnp.dot(x_ref[...], w1_ref[...],
                            preferred_element_type=jnp.float32)

    @pl.when(k == pl.num_programs(1) - 1)
    def _():
        h = jnp.maximum(acc_ref[...], 0.0)
        o = jnp.dot(h.astype(w2_ref.dtype), w2_ref[...],
                    preferred_element_type=jnp.float32)
        o_ref[...] = jnp.maximum(o + b2_ref[...], 0.0).astype(o_ref.dtype)


# ----------------------------------------------------------------------------
# Wrapper
# ----------------------------------------------------------------------------
def extra2_forward(x, w1, b1, w2, b2, *, tile_m=512, tile_k=2048,
                   compute_dtype=None, force_k_split=False):
    """Fused Extra2 forward pass: relu(relu(x @ w1 + b1) @ w2 + b2).

    compute_dtype: dtype fed to the MXU (jnp.bfloat16 recommended on v6e/v7x);
                   accumulation and bias/ReLU are always f32.
    """
    B, H = x.shape
    assert w1.shape == (H, D1) and w2.shape == (D1, D2)
    out_dtype = x.dtype
    if compute_dtype is None:
        compute_dtype = x.dtype
    it = jnp.dtype(compute_dtype).itemsize
    out_it = jnp.dtype(out_dtype).itemsize

    vmem_cap, is_v7 = _hw_info()
    budget = int(vmem_cap * 0.4)        # ~25 MiB on v7x, ~51 MiB on v5e/v6e

    # ---- batch tile -------------------------------------------------------
    if B <= tile_m:
        tm = B                                   # block dim == full array dim
    else:
        tm = max(8, (tile_m // 8) * 8)
    # Only on v7x (2 TensorCores) force >= 2 batch tiles for medium batches.
    if is_v7 and B >= 16 and pl.cdiv(B, tm) < 2:
        tm = max(8, _round_up(pl.cdiv(B, 2), 8))

    # ---- small padded parameters (cheap, layout plumbing only) ------------
    w2p = jnp.pad(w2.astype(compute_dtype), ((0, 0), (0, D2P - D2)))
    b1p = b1.reshape(1, D1).astype(jnp.float32)
    b2p = jnp.pad(b2.reshape(1, D2).astype(jnp.float32),
                  ((0, 0), (0, D2P - D2)))

    # ---- single-shot fit check (w1 fully resident) ------------------------
    def _single_need(t):
        return (2 * H * D1 * it            # w1 (double-buffer worst case)
                + 2 * t * H * it           # x tiles (double-buffered)
                + 2 * D1 * D2P * it        # w2 (resident)
                + 2 * t * D2P * out_it     # output tiles
                + t * D1 * 4               # f32 layer-1 intermediate
                + 32 * (D1 + D2P))         # biases + slack

    tm_ss = tm
    while _single_need(tm_ss) > budget and tm_ss > 64:
        tm_ss = max(64, _round_up((tm_ss + 1) // 2, 8))
    use_single = (not force_k_split) and _single_need(tm_ss) <= budget

    if use_single:
        tm = tm_ss
        xp = x.astype(compute_dtype)
        w1p = w1.astype(compute_dtype)
        grid = (pl.cdiv(B, tm),)
        need = _single_need(tm)
        vmem_limit = int(min(int(vmem_cap * 0.75),
                             max(int(need * 1.5), 32 << 20)))
        flops = 2 * B * H * D1 + 2 * B * D1 * D2P
        bytes_accessed = (B * H * it + H * D1 * it + D1 * D2P * it
                          + B * D2P * out_it + 4 * (D1 + D2P))

        out = pl.pallas_call(
            _extra2_single_kernel,
            out_shape=jax.ShapeDtypeStruct((B, D2P), out_dtype),
            grid_spec=pltpu.PrefetchScalarGridSpec(
                num_scalar_prefetch=0,
                grid=grid,
                in_specs=[
                    pl.BlockSpec((tm, H), lambda i: (i, 0)),      # x tile
                    pl.BlockSpec((H, D1), lambda i: (0, 0)),      # w1 resident
                    pl.BlockSpec((1, D1), lambda i: (0, 0)),      # b1
                    pl.BlockSpec((D1, D2P), lambda i: (0, 0)),    # w2 resident
                    pl.BlockSpec((1, D2P), lambda i: (0, 0)),     # b2
                ],
                out_specs=pl.BlockSpec((tm, D2P), lambda i: (i, 0)),
            ),
            compiler_params=pltpu.CompilerParams(
                dimension_semantics=("parallel",),
                vmem_limit_bytes=vmem_limit),
            cost_estimate=pl.CostEstimate(flops=flops, transcendentals=0,
                                          bytes_accessed=bytes_accessed),
        )(xp, w1p, b1p, w2p, b2p)
        return out[:, :D2]

    # ---- K-split fallback (very large h_dim) ------------------------------
    def _ks_need(t, k):
        return (2 * t * k * it             # x tiles
                + 2 * k * D1 * it          # w1 K-slices
                + 2 * D1 * D2P * it        # w2 resident
                + 2 * t * D2P * out_it     # output tiles
                + 2 * t * D1 * 4           # acc scratch + h intermediate
                + 32 * (D1 + D2P))

    cands = sorted({c for c in (tile_k, 4096, 2048, 1024, 512, 256, 128)
                    if isinstance(c, int) and c >= 128 and c % 128 == 0},
                   reverse=True)
    h128 = _round_up(H, 128)
    fitting = [c for c in cands if c <= h128 and _ks_need(tm, c) <= budget]
    if not fitting:
        fitting = [128]
    dividing = [c for c in fitting if H % c == 0]
    tk = dividing[0] if dividing else fitting[0]   # prefer no padding of x
    Hp = _round_up(H, tk)

    xp = x.astype(compute_dtype)
    w1p = w1.astype(compute_dtype)
    if Hp != H:
        # Only pad when no fitting tile_k divides H (ragged K must be zeroed).
        xp = jnp.pad(xp, ((0, 0), (0, Hp - H)))
        w1p = jnp.pad(w1p, ((0, Hp - H), (0, 0)))

    grid = (pl.cdiv(B, tm), Hp // tk)
    need = _ks_need(tm, tk)
    vmem_limit = int(min(int(vmem_cap * 0.75),
                         max(int(need * 1.5), 32 << 20)))
    flops = 2 * B * Hp * D1 + 2 * B * D1 * D2P
    bytes_accessed = (B * Hp * it + pl.cdiv(B, tm) * Hp * D1 * it
                      + D1 * D2P * it + B * D2P * out_it + 4 * (D1 + D2P))

    out = pl.pallas_call(
        _extra2_ksplit_kernel,
        out_shape=jax.ShapeDtypeStruct((B, D2P), out_dtype),
        grid_spec=pltpu.PrefetchScalarGridSpec(
            num_scalar_prefetch=0,
            grid=grid,
            in_specs=[
                pl.BlockSpec((tm, tk), lambda i, k: (i, k)),      # x tile
                pl.BlockSpec((tk, D1), lambda i, k: (k, 0)),      # w1 K-slice
                pl.BlockSpec((1, D1), lambda i, k: (0, 0)),       # b1
                pl.BlockSpec((D1, D2P), lambda i, k: (0, 0)),     # w2 resident
                pl.BlockSpec((1, D2P), lambda i, k: (0, 0)),      # b2
            ],
            out_specs=pl.BlockSpec((tm, D2P), lambda i, k: (i, 0)),
            scratch_shapes=[pltpu.VMEM((tm, D1), jnp.float32)],
        ),
        compiler_params=pltpu.CompilerParams(
            dimension_semantics=("parallel", "arbitrary"),
            vmem_limit_bytes=vmem_limit),
        cost_estimate=pl.CostEstimate(flops=flops, transcendentals=0,
                                      bytes_accessed=bytes_accessed),
    )(xp, w1p, b1p, w2p, b2p)
    return out[:, :D2]


# ----------------------------------------------------------------------------
# Demo / correctness check
# ----------------------------------------------------------------------------
def _init_params(key, h_dim):
    # Deterministic synthetic init (≈ PyTorch uniform(-1/sqrt(fan_in), ...)).
    k1, k2, k3, k4 = jax.random.split(key, 4)
    lim1 = 1.0 / jnp.sqrt(h_dim)
    lim2 = 1.0 / jnp.sqrt(512.0)
    w1 = jax.random.uniform(k1, (h_dim, D1), jnp.float32, -lim1, lim1)
    b1 = jax.random.uniform(k2, (1, D1), jnp.float32, -lim1, lim1)
    w2 = jax.random.uniform(k3, (D1, D2), jnp.float32, -lim2, lim2)
    b2 = jax.random.uniform(k4, (1, D2), jnp.float32, -lim2, lim2)
    return w1, b1, w2, b2


def _reference(x, w1, b1, w2, b2):
    h = jnp.maximum(x @ w1 + b1, 0.0)
    return jnp.maximum(h @ w2 + b2, 0.0)


if __name__ == "__main__":
    key = jax.random.PRNGKey(0)
    kx, kp, kx2, kx3, kp3 = jax.random.split(key, 5)

    # 1) small shapes consistent with the module (batch=8, hidden=32), f32
    batch, h_dim = 8, 32
    x = jax.random.normal(kx, (batch, h_dim), jnp.float32)
    w1, b1, w2, b2 = _init_params(kp, h_dim)
    out = jax.block_until_ready(extra2_forward(x, w1, b1, w2, b2))
    ref = _reference(x, w1, b1, w2, b2)
    assert out.shape == (batch, D2)
    assert jnp.allclose(out, ref, atol=1e-3, rtol=1e-3)

    # 2) bf16 compute path (f32 accumulation) — looser tolerance
    out_bf16 = jax.block_until_ready(
        extra2_forward(x, w1, b1, w2, b2, compute_dtype=jnp.bfloat16))
    assert jnp.allclose(out_bf16, ref, atol=5e-2, rtol=5e-2)

    # 3) non-multiple-of-8 batch, single-shot path, no padding of x
    batch2, h_dim2 = 100, 96
    x2 = jax.random.normal(kx2, (batch2, h_dim2), jnp.float32)
    w1b, b1b, w2b, b2b = _init_params(kp, h_dim2)
    out2 = jax.block_until_ready(extra2_forward(x2, w1b, b1b, w2b, b2b))
    ref2 = _reference(x2, w1b, b1b, w2b, b2b)
    assert out2.shape == (batch2, D2)
    assert jnp.allclose(out2, ref2, atol=1e-3, rtol=1e-3)

    # 4) exercise the K-split fallback kernel (forced, small shapes)
    batch3, h_dim3 = 100, 384
    x3 = jax.random.normal(kx3, (batch3, h_dim3), jnp.float32)
    w1c, b1c, w2c, b2c = _init_params(kp3, h_dim3)
    out3 = jax.block_until_ready(
        extra2_forward(x3, w1c, b1c, w2c, b2c, tile_k=128, force_k_split=True))
    ref3 = _reference(x3, w1c, b1c, w2c, b2c)
    assert out3.shape == (batch3, D2)
    assert jnp.allclose(out3, ref3, atol=1e-3, rtol=1e-3)

    print("KERNEL_OK")
</pallas_src>

<mosaic_0001>
module attributes {stable_mosaic.version = 11 : i64} {
  func.func @_extra2_single_kernel(%arg0: i32, %arg1: memref<8x32xf32, #tpu.memory_space<vmem>>, %arg2: memref<32x512xf32, #tpu.memory_space<vmem>>, %arg3: memref<1x512xf32, #tpu.memory_space<vmem>>, %arg4: memref<512x128xf32, #tpu.memory_space<vmem>>, %arg5: memref<1x128xf32, #tpu.memory_space<vmem>>, %arg6: memref<8x128xf32, #tpu.memory_space<vmem>>) attributes {dimension_semantics = [#tpu.dimension_semantics<parallel>], iteration_bounds = array<i64: 1>, scalar_prefetch = 0 : i64, scratch_operands = 0 : i64, tpu.core_type = #tpu.core_type<tc>, window_params = [{transform_indices = @transform_0, window_bounds = array<i64: 8, 32>}, {pipeline_mode = #tpu.pipeline_mode<synchronous>, transform_indices = @transform_1, window_bounds = array<i64: 32, 512>}, {pipeline_mode = #tpu.pipeline_mode<synchronous>, transform_indices = @transform_2, window_bounds = array<i64: 1, 512>}, {pipeline_mode = #tpu.pipeline_mode<synchronous>, transform_indices = @transform_3, window_bounds = array<i64: 512, 128>}, {pipeline_mode = #tpu.pipeline_mode<synchronous>, transform_indices = @transform_4, window_bounds = array<i64: 1, 128>}, {transform_indices = @transform_5, window_bounds = array<i64: 8, 128>}]} {
    %c0 = arith.constant 0 : index
    %c0_0 = arith.constant 0 : index
    %0 = vector.load %arg1[%c0, %c0_0] : memref<8x32xf32, #tpu.memory_space<vmem>>, vector<8x32xf32>
    %c0_1 = arith.constant 0 : index
    %c0_2 = arith.constant 0 : index
    %1 = vector.load %arg2[%c0_1, %c0_2] : memref<32x512xf32, #tpu.memory_space<vmem>>, vector<32x512xf32>
    %cst = arith.constant dense<0.000000e+00> : vector<8x512xf32>
    %2 = tpu.matmul %0, %1, %cst {dimension_numbers = #tpu.dot_dimension_numbers<[1], [0], [0], [1], [0, 0, 1, 1], [], []>} : vector<8x32xf32>, vector<32x512xf32>, vector<8x512xf32> -> vector<8x512xf32>
    %c0_3 = arith.constant 0 : index
    %c0_4 = arith.constant 0 : index
    %3 = vector.load %arg3[%c0_3, %c0_4] : memref<1x512xf32, #tpu.memory_space<vmem>>, vector<1x512xf32>
    %4 = vector.broadcast %3 : vector<1x512xf32> to vector<8x512xf32>
    %5 = arith.addf %2, %4 : vector<8x512xf32>
    %cst_5 = arith.constant 0.000000e+00 : f32
    %6 = vector.broadcast %cst_5 : f32 to vector<8x512xf32>
    %7 = arith.maximumf %5, %6 : vector<8x512xf32>
    %c0_6 = arith.constant 0 : index
    %c0_7 = arith.constant 0 : index
    %8 = vector.load %arg4[%c0_6, %c0_7] : memref<512x128xf32, #tpu.memory_space<vmem>>, vector<512x128xf32>
    %cst_8 = arith.constant dense<0.000000e+00> : vector<8x128xf32>
    %9 = tpu.matmul %7, %8, %cst_8 {dimension_numbers = #tpu.dot_dimension_numbers<[1], [0], [0], [1], [0, 0, 1, 1], [], []>} : vector<8x512xf32>, vector<512x128xf32>, vector<8x128xf32> -> vector<8x128xf32>
    %c0_9 = arith.constant 0 : index
    %c0_10 = arith.constant 0 : index
    %10 = vector.load %arg5[%c0_9, %c0_10] : memref<1x128xf32, #tpu.memory_space<vmem>>, vector<1x128xf32>
    %11 = vector.broadcast %10 : vector<1x128xf32> to vector<8x128xf32>
    %12 = arith.addf %9, %11 : vector<8x128xf32>
    %cst_11 = arith.constant 0.000000e+00 : f32
    %13 = vector.broadcast %cst_11 : f32 to vector<8x128xf32>
    %14 = arith.maximumf %12, %13 : vector<8x128xf32>
    %c0_12 = arith.constant 0 : index
    %c0_13 = arith.constant 0 : index
    %15 = vector.load %arg6[%c0_12, %c0_13] : memref<8x128xf32, #tpu.memory_space<vmem>>, vector<8x128xf32>
    tpu.vector_store %arg6[%c0_12, %c0_13], %14 {strides = array<i32>} : memref<8x128xf32, #tpu.memory_space<vmem>>, vector<8x128xf32>,
    return
  }
  func.func @transform_0(%arg0: i32) -> (i32, i32) {
    %c0_i32 = arith.constant 0 : i32
    %c0_i32_0 = arith.constant 0 : i32
    return %arg0, %c0_i32 : i32, i32
  }
  func.func @transform_1(%arg0: i32) -> (i32, i32) {
    %c0_i32 = arith.constant 0 : i32
    %c0_i32_0 = arith.constant 0 : i32
    %c0_i32_1 = arith.constant 0 : i32
    return %c0_i32, %c0_i32_0 : i32, i32
  }
  func.func @transform_2(%arg0: i32) -> (i32, i32) {
    %c0_i32 = arith.constant 0 : i32
    %c0_i32_0 = arith.constant 0 : i32
    %c0_i32_1 = arith.constant 0 : i32
    return %c0_i32, %c0_i32_0 : i32, i32
  }
  func.func @transform_3(%arg0: i32) -> (i32, i32) {
    %c0_i32 = arith.constant 0 : i32
    %c0_i32_0 = arith.constant 0 : i32
    %c0_i32_1 = arith.constant 0 : i32
    return %c0_i32, %c0_i32_0 : i32, i32
  }
  func.func @transform_4(%arg0: i32) -> (i32, i32) {
    %c0_i32 = arith.constant 0 : i32
    %c0_i32_0 = arith.constant 0 : i32
    %c0_i32_1 = arith.constant 0 : i32
    return %c0_i32, %c0_i32_0 : i32, i32
  }
  func.func @transform_5(%arg0: i32) -> (i32, i32) {
    %c0_i32 = arith.constant 0 : i32
    %c0_i32_0 = arith.constant 0 : i32
    return %arg0, %c0_i32 : i32, i32
  }
}

</mosaic_0001>

<bundles_post_ra>
// kernel: tpu_custom_call.1
= control target key start
LH: loop header
LB: loop body
LE: loop exit
PB: predicated region body
PF: predicated region fallthrough
CT: control target
= control target key end

     0   :  { %10 = vsyncpa [#allocation3], 0  ;;  %s829_s0 = inlined_call_operand.hbm [shape: f32[8,32], index: 0, kind: input, shape index: {}]   ;;  %s830_s1 = inlined_call_operand.hbm [shape: f32[32,512], index: 1, kind: input, shape index: {}]   ;;  %s831_s2 = inlined_call_operand.vmem [shape: f32[1,512], index: 2, kind: input, shape index: {}]   ;;  %s832_s3 = inlined_call_operand.hbm [shape: f32[512,128], index: 3, kind: input, shape index: {}]   ;;  %s833_s4 = inlined_call_operand.vmem [shape: f32[1,128], index: 4, kind: input, shape index: {}]   ;;  %s834_s5 = inlined_call_operand.hbm [shape: f32[8,128], index: 5, kind: output, shape index: {}]  }
   0x1   :  { %11 = vsyncpa [#allocation6], 0 }
   0x2   :  { %12 = vsyncpa [#allocation4], 0  ;;  %s734_s18 = smov [#allocation5]   ;;  %s640_s22 = scalar_lea.hbm %s830_s1, 2048 }
   0x3   :  { %s28_s19 = sshll.u32 %s734_s18, 4  ;;  %p641_p0 = scmp.ne.s32.totalorder %s830_s1, %s640_s22  ;;  %s29_s19 = int_to_ptr.vmem [resolvable:$true] %s28_s19 }
   0x4   :  { %p644_p1 = scmp.lt.u32.totalorder %s640_s22, %s830_s1 }
   0x6   :  { %p646_p2 = pnand %p644_p1, %p641_p0 }
   0x8   :  { %649 = shalt.err (!%p646_p2)
}
   0x9   :  { %s650_s27 = scalar_lea.vmem %s29_s19, 2048  ;;  %p655_p4 = scmp.lt.s32.totalorder %s29_s19, %s29_s19 }
   0xa   :  { %p651_p3 = scmp.ne.s32.totalorder %s29_s19, %s650_s27  ;;  %p656_p5 = scmp.lt.s32.totalorder %s650_s27, %s650_s27 }
   0xc   :  { %p657_p6 = por %p656_p5, %p655_p4 }
   0xe   :  { %p658_p7 = pnand %p657_p6, %p651_p3 }
  0x10   :  { %661 = shalt.err (!%p658_p7)
}
  0x11   :  { %s735_s28 = smov 512   ;;  %s736_s29 = smov 32  }
  0x12   :  { %34 = dma.hbm_to_vmem [thread:$0]  %s830_s1, 2048, %s29_s19, [#allocation6], %s735_s28, %s735_s28, %s736_s29  }
  0x13   :  { %s737_s7 = smov [#allocation2]   ;;  %s738_s9 = smov [#allocation7]  }
  0x14   :  { %s19_s8 = sshll.u32 %s737_s7, 4  ;;  %s42_s10 = sshll.u32 %s738_s9, 4  ;;  %s20_s8 = int_to_ptr.vmem [resolvable:$true] %s19_s8  ;;  %s43_s10 = int_to_ptr.vmem [resolvable:$true] %s42_s10 }
  0x15   :  { %s662_s13 = scalar_lea.hbm %s829_s0, 128 }
  0x16   :  { %p663_p8 = scmp.ne.s32.totalorder %s829_s0, %s662_s13  ;;  %p666_p9 = scmp.lt.u32.totalorder %s662_s13, %s829_s0 }
  0x18   :  { %p668_p10 = pnand %p666_p9, %p663_p8 }
  0x1a   :  { %671 = shalt.err (!%p668_p10)
}
  0x1b   :  { %s672_s1 = scalar_lea.vmem %s20_s8, 128  ;;  %p677_p12 = scmp.lt.s32.totalorder %s20_s8, %s20_s8 }
  0x1c   :  { %p673_p11 = scmp.ne.s32.totalorder %s20_s8, %s672_s1  ;;  %p678_p13 = scmp.lt.s32.totalorder %s672_s1, %s672_s1 }
  0x1e   :  { %p679_p0 = por %p678_p13, %p677_p12 }
  0x20   :  { %p680_p1 = pnand %p679_p0, %p673_p11 }
  0x22   :  { %683 = shalt.err (!%p680_p1)
}
  0x23   :  { %22 = dma.hbm_to_vmem [thread:$0]  %s829_s0, 128, %s20_s8, [#allocation3]  }
  0x24   :  { %s684_s22 = scalar_lea.hbm %s832_s3, 8192 }
  0x25   :  { %p685_p2 = scmp.ne.s32.totalorder %s832_s3, %s684_s22  ;;  %p688_p3 = scmp.lt.u32.totalorder %s684_s22, %s832_s3 }
  0x27   :  { %p690_p4 = pnand %p688_p3, %p685_p2 }
  0x29   :  { %693 = shalt.err (!%p690_p4)
}
  0x2a   :  { %s694_s27 = scalar_lea.vmem %s43_s10, 8192  ;;  %p699_p6 = scmp.lt.s32.totalorder %s43_s10, %s43_s10 }
  0x2b   :  { %p695_p5 = scmp.ne.s32.totalorder %s43_s10, %s694_s27  ;;  %p700_p7 = scmp.lt.s32.totalorder %s694_s27, %s694_s27 }
  0x2d   :  { %p701_p8 = por %p700_p7, %p699_p6 }
  0x2f   :  { %p702_p9 = pnand %p701_p8, %p695_p5 }
  0x31   :  { %705 = shalt.err (!%p702_p9)
}
  0x32   :  { %s739_s0 = smov 128   ;;  %s740_s28 = smov 8  }
  0x33   :  { %48 = dma.hbm_to_vmem [thread:$0]  %s832_s3, 8192, %s43_s10, [#allocation6], %s739_s0, %s739_s0, %s740_s28  }
  0x34   :  { %728 = dma.done.wait [#allocation3], 128  }
  0x35   :  { %729 = vsyncadd [#allocation3], 4294967168 }
  0x36   :  { %730 = dma.done.wait [#allocation6], 10240  }
  0x37   :  { %731 = vsyncadd [#allocation6], 4294957056  ;;  %v741_v0 = vmov 0.0   ;;  %v62_v1 = vld [vmem:[#allocation5 + $0x8] sm:$0xff]  ;;  %v64_v3 = vld [vmem:[#allocation5 + $0x18] sm:$0xff]  ;;  %vm99_vm0 = vcmask 261120  }
  0x38   :  { %167 = vmatprep.mubr.f32.mxu0 %v741_v0  ;;  %238 = vmatprep.mubr.f32.mxu1 %v741_v0  ;;  %v66_v2 = vld [vmem:[#allocation5 + $0x28] sm:$0xff]  ;;  %v68_v5 = vld [vmem:[#allocation5 + $0x38] sm:$0xff]  ;;  %v61_v6 = vld [vmem:[#allocation5] sm:$0xff]  ;;  %s742_s8 = smov [#allocation8]  }
  0x39   :  { %v551_v4 = vpack.c.bf16 %v66_v2, %v62_v1  ;;  %v65_v7 = vld [vmem:[#allocation5 + $0x20] sm:$0xff]  ;;  %v559_v8 = vpack.c.bf16 %v68_v5, %v64_v3  ;;  %v63_v10 = vld [vmem:[#allocation5 + $0x10] sm:$0xff]  ;;  %v70_v12 = vld [vmem:[#allocation5 + $0x48] sm:$0xff]  ;;  %s468_s9 = sshll.u32 %s742_s8, 4  ;;  %s469_s9 = int_to_ptr.vmem [resolvable:$true] %s468_s9 }
  0x3a   :  { %v553_v9 = vpack.c.bf16 %v65_v7, %v61_v6  ;;  %v67_v11 = vld [vmem:[#allocation5 + $0x30] sm:$0xff]  ;;  %v74_v14 = vld [vmem:[#allocation5 + $0x68] sm:$0xff]  ;;  %v72_v15 = vld [vmem:[#allocation5 + $0x58] sm:$0xff]  ;;  %s706_s10 = scalar_lea.vmem %s469_s9, 128  ;;  %p711_p11 = scmp.lt.s32.totalorder %s469_s9, %s469_s9 }
  0x3b   :  { %552 = vmatprep.subr.bf16.mxu0 %v551_v4  ;;  %v561_v13 = vpack.c.bf16 %v67_v11, %v63_v10  ;;  %v76_v16 = vld [vmem:[#allocation5 + $0x78] sm:$0xff]  ;;  %560 = vmatprep.subr.bf16.mxu1 %v559_v8  ;;  %v555_v17 = vpack.c.bf16 %v74_v14, %v70_v12  ;;  %v69_v19 = vld [vmem:[#allocation5 + $0x40] sm:$0xff]  ;;  %v71_v21 = vld [vmem:[#allocation5 + $0x50] sm:$0xff]  ;;  %p707_p10 = scmp.ne.s32.totalorder %s469_s9, %s706_s10  ;;  %p712_p12 = scmp.lt.s32.totalorder %s706_s10, %s706_s10 }
  0x3c   :  { %554 = vmatpush1.bf16.msra.mxu0 %v553_v9  ;;  %v563_v18 = vpack.c.bf16 %v76_v16, %v72_v15  ;;  %v73_v20 = vld [vmem:[#allocation5 + $0x60] sm:$0xff]  ;;  %v75_v23 = vld [vmem:[#allocation5 + $0x70] sm:$0xff]  ;;  %v60_v26 = vld [vmem:[#allocation2] sm:$0xff] }
  0x3d   :  { %562 = vmatpush1.bf16.msra.mxu1 %v561_v13  ;;  %v557_v22 = vpack.c.bf16 %v73_v20, %v69_v19  ;;  %v265_v24 = vld [vmem:[#allocation7 + $0x80] sm:$0xff]  ;;  %556 = vmatprep.subr.bf16.mxu0 %v555_v17  ;;  %v565_v25 = vpack.c.bf16 %v75_v23, %v71_v21  ;;  %v266_v27 = vld [vmem:[#allocation7 + $0x88] sm:$0xff]  ;;  %v267_v37 = vld [vmem:[#allocation7 + $0x90] sm:$0xff]  ;;  %p713_p13 = por %p712_p12, %p711_p11 }
  0x3e   :  { %564 = vmatprep.subr.bf16.mxu1 %v563_v18  ;;  %v297_v28 = vld [vmem:[#allocation7 + $0x180] sm:$0xff]  ;;  %v298_v29 = vld [vmem:[#allocation7 + $0x188] sm:$0xff]  ;;  %v567_v30 = vpack.c.bf16 %v266_v27, %v265_v24  ;;  %v268_v38 = vld [vmem:[#allocation7 + $0x98] sm:$0xff] }
  0x3f   :  { %v599_v31 = vpack.c.bf16 %v298_v29, %v297_v28  ;;  %v249_v32 = vld [vmem:[#allocation7] sm:$0xff]  ;;  %v250_v33 = vld [vmem:[#allocation7 + $0x8] sm:$0xff]  ;;  %v571_v40 = vpack.c.bf16 %v268_v38, %v267_v37  ;;  %v299_v41 = vld [vmem:[#allocation7 + $0x190] sm:$0xff]  ;;  %p714_p0 = pnand %p713_p13, %p707_p10 }
  0x40   :  { %v281_v34 = vld [vmem:[#allocation7 + $0x100] sm:$0xff]  ;;  %558 = vmatpush1.bf16.msra.mxu0 %v557_v22  ;;  %v569_v35 = vpack.c.bf16 %v250_v33, %v249_v32  ;;  %v282_v36 = vld [vmem:[#allocation7 + $0x108] sm:$0xff]  ;;  %v300_v42 = vld [vmem:[#allocation7 + $0x198] sm:$0xff] }
  0x41   :  { %566 = vmatpush1.bf16.msra.mxu1 %v565_v25  ;;  %568 = vmatprep.subr.bf16.mxu0 %v567_v30  ;;  %v601_v39 = vpack.c.bf16 %v282_v36, %v281_v34  ;;  %v251_v43 = vld [vmem:[#allocation7 + $0x10] sm:$0xff]  ;;  %v603_v44 = vpack.c.bf16 %v300_v42, %v299_v41  ;;  %v252_v45 = vld [vmem:[#allocation7 + $0x18] sm:$0xff]  ;;  %v269_v48 = vld [vmem:[#allocation7 + $0xa0] sm:$0xff] }
  0x42   :  { %600 = vmatprep.subr.bf16.mxu1 %v599_v31  ;;  %v283_v46 = vld [vmem:[#allocation7 + $0x110] sm:$0xff]  ;;  %v284_v47 = vld [vmem:[#allocation7 + $0x118] sm:$0xff]  ;;  %v270_v49 = vld [vmem:[#allocation7 + $0xa8] sm:$0xff]  ;;  %v573_v51 = vpack.c.bf16 %v252_v45, %v251_v43 }
  0x43   :  { %478 = vmatmul.mubr.msk.f32.vlgmr.msra.gmra.mrb[0].mxu0 %vm99_vm0, %v60_v26  ;;  %v301_v50 = vld [vmem:[#allocation7 + $0x1a0] sm:$0xff]  ;;  %v302_v52 = vld [vmem:[#allocation7 + $0x1a8] sm:$0xff]  ;;  %v605_v53 = vpack.c.bf16 %v284_v47, %v283_v46  ;;  %v575_v54 = vpack.c.bf16 %v270_v49, %v269_v48  ;;  %v271_v60 = vld [vmem:[#allocation7 + $0xb0] sm:$0xff] }
  0x44   :  { %479 = vmatmul.mubr.msk.f32.vlgmr.msra.gmra.mrb[0].mxu1 %vm99_vm0, %v60_v26  ;;  %570 = vmatpush3.bf16.msra.mxu0 %v569_v35  ;;  %v253_v55 = vld [vmem:[#allocation7 + $0x20] sm:$0xff]  ;;  %v254_v56 = vld [vmem:[#allocation7 + $0x28] sm:$0xff]  ;;  %v607_v58 = vpack.c.bf16 %v302_v52, %v301_v50  ;;  %v272_v61 = vld [vmem:[#allocation7 + $0xb8] sm:$0xff] }
  0x45   :  { %602 = vmatpush3.bf16.msra.mxu1 %v601_v39  ;;  %572 = vmatprep.subr.bf16.mxu0 %v571_v40  ;;  %v285_v57 = vld [vmem:[#allocation7 + $0x120] sm:$0xff]  ;;  %v286_v59 = vld [vmem:[#allocation7 + $0x128] sm:$0xff]  ;;  %v303_v62 = vld [vmem:[#allocation7 + $0x1b0] sm:$0xff]  ;;  %v577_v0 = vpack.c.bf16 %v254_v56, %v253_v55  ;;  %v579_v2 = vpack.c.bf16 %v272_v61, %v271_v60 }
  0x46   :  { %604 = vmatprep.subr.bf16.mxu1 %v603_v44  ;;  %v304_v63 = vld [vmem:[#allocation7 + $0x1b8] sm:$0xff]  ;;  %v609_v1 = vpack.c.bf16 %v286_v59, %v285_v57  ;;  %v255_v3 = vld [vmem:[#allocation7 + $0x30] sm:$0xff]  ;;  %v273_v8 = vld [vmem:[#allocation7 + $0xc0] sm:$0xff] }
  0x47   :  { %v256_v4 = vld [vmem:[#allocation7 + $0x38] sm:$0xff]  ;;  %v287_v5 = vld [vmem:[#allocation7 + $0x130] sm:$0xff]  ;;  %v611_v6 = vpack.c.bf16 %v304_v63, %v303_v62  ;;  %v274_v9 = vld [vmem:[#allocation7 + $0xc8] sm:$0xff] }
  0x48   :  { %574 = vmatpush3.bf16.msra.mxu0 %v573_v51  ;;  %v288_v7 = vld [vmem:[#allocation7 + $0x138] sm:$0xff]  ;;  %v305_v10 = vld [vmem:[#allocation7 + $0x1c0] sm:$0xff]  ;;  %v306_v11 = vld [vmem:[#allocation7 + $0x1c8] sm:$0xff]  ;;  %v581_v12 = vpack.c.bf16 %v256_v4, %v255_v3  ;;  %v583_v14 = vpack.c.bf16 %v274_v9, %v273_v8 }
  0x49   :  { %606 = vmatpush3.bf16.msra.mxu1 %v605_v53  ;;  %576 = vmatprep.subr.bf16.mxu0 %v575_v54  ;;  %v613_v13 = vpack.c.bf16 %v288_v7, %v287_v5  ;;  %v257_v15 = vld [vmem:[#allocation7 + $0x40] sm:$0xff]  ;;  %v258_v16 = vld [vmem:[#allocation7 + $0x48] sm:$0xff]  ;;  %v615_v18 = vpack.c.bf16 %v306_v11, %v305_v10  ;;  %v275_v20 = vld [vmem:[#allocation7 + $0xd0] sm:$0xff] }
  0x4a   :  { %608 = vmatprep.subr.bf16.mxu1 %v607_v58  ;;  %v289_v17 = vld [vmem:[#allocation7 + $0x140] sm:$0xff]  ;;  %v290_v19 = vld [vmem:[#allocation7 + $0x148] sm:$0xff]  ;;  %v276_v21 = vld [vmem:[#allocation7 + $0xd8] sm:$0xff]  ;;  %v585_v24 = vpack.c.bf16 %v258_v16, %v257_v15  ;;  %v79_v58 = vlaneseq }
  0x4b   :  { %v307_v22 = vld [vmem:[#allocation7 + $0x1d0] sm:$0xff]  ;;  %v308_v23 = vld [vmem:[#allocation7 + $0x1d8] sm:$0xff]  ;;  %v617_v25 = vpack.c.bf16 %v290_v19, %v289_v17  ;;  %v587_v26 = vpack.c.bf16 %v276_v21, %v275_v20  ;;  %v277_v32 = vld [vmem:[#allocation7 + $0xe0] sm:$0xff] }
  0x4c   :  { %578 = vmatpush3.bf16.msra.mxu0 %v577_v0  ;;  %v259_v27 = vld [vmem:[#allocation7 + $0x50] sm:$0xff]  ;;  %v260_v28 = vld [vmem:[#allocation7 + $0x58] sm:$0xff]  ;;  %v619_v30 = vpack.c.bf16 %v308_v23, %v307_v22  ;;  %v278_v33 = vld [vmem:[#allocation7 + $0xe8] sm:$0xff]  ;;  %v80_v59 = vshrl.u32 %v79_v58, 7 }
  0x4d   :  { %610 = vmatpush3.bf16.msra.mxu1 %v609_v1  ;;  %580 = vmatprep.subr.bf16.mxu0 %v579_v2  ;;  %v291_v29 = vld [vmem:[#allocation7 + $0x150] sm:$0xff]  ;;  %v292_v31 = vld [vmem:[#allocation7 + $0x158] sm:$0xff]  ;;  %v309_v34 = vld [vmem:[#allocation7 + $0x1e0] sm:$0xff]  ;;  %v589_v36 = vpack.c.bf16 %v260_v28, %v259_v27  ;;  %v591_v38 = vpack.c.bf16 %v278_v33, %v277_v32 }
  0x4e   :  { %612 = vmatprep.subr.bf16.mxu1 %v611_v6  ;;  %v310_v35 = vld [vmem:[#allocation7 + $0x1e8] sm:$0xff]  ;;  %v621_v37 = vpack.c.bf16 %v292_v31, %v291_v29  ;;  %v261_v40 = vld [vmem:[#allocation7 + $0x60] sm:$0xff]  ;;  %v279_v46 = vld [vmem:[#allocation7 + $0xf0] sm:$0xff]  ;;  %v81_v60 = vsub.s32 0, %v80_v59  ;;  %v89_v62 = vsub.s32 2, %v80_v59  ;;  %v85_v63 = vsub.s32 1, %v80_v59 }
  0x4f   :  { %v623_v39 = vpack.c.bf16 %v310_v35, %v309_v34  ;;  %v262_v41 = vld [vmem:[#allocation7 + $0x68] sm:$0xff]  ;;  %v293_v42 = vld [vmem:[#allocation7 + $0x160] sm:$0xff]  ;;  %v280_v47 = vld [vmem:[#allocation7 + $0xf8] sm:$0xff]  ;;  %v93_v0 = vsub.s32 3, %v80_v59 }
  0x50   :  { %582 = vmatpush3.bf16.msra.mxu0 %v581_v12  ;;  %v593_v43 = vpack.c.bf16 %v262_v41, %v261_v40  ;;  %v294_v44 = vld [vmem:[#allocation7 + $0x168] sm:$0xff]  ;;  %v311_v48 = vld [vmem:[#allocation7 + $0x1f0] sm:$0xff]  ;;  %v595_v49 = vpack.c.bf16 %v280_v47, %v279_v46  ;;  %v312_v50 = vld [vmem:[#allocation7 + $0x1f8] sm:$0xff] }
  0x51   :  { %614 = vmatpush3.bf16.msra.mxu1 %v613_v13  ;;  %584 = vmatprep.subr.bf16.mxu0 %v583_v14  ;;  %v625_v45 = vpack.c.bf16 %v294_v44, %v293_v42  ;;  %v263_v51 = vld [vmem:[#allocation7 + $0x70] sm:$0xff]  ;;  %v264_v52 = vld [vmem:[#allocation7 + $0x78] sm:$0xff]  ;;  %v627_v53 = vpack.c.bf16 %v312_v50, %v311_v48 }
  0x52   :  { %616 = vmatprep.subr.bf16.mxu1 %v615_v18  ;;  %v597_v54 = vpack.c.bf16 %v264_v52, %v263_v51  ;;  %v295_v55 = vld [vmem:[#allocation7 + $0x170] sm:$0xff]  ;;  %v296_v56 = vld [vmem:[#allocation7 + $0x178] sm:$0xff] }
  0x53   :  { %v629_v57 = vpack.c.bf16 %v296_v56, %v295_v55  ;;  %v77_v61 = vld [vmem:[%s831_s2] sm:$0xf] }
  0x54   :  { %586 = vmatpush3.bf16.msra.mxu0 %v585_v24  ;;  %v82_v1 = vrot.slane %v77_v61, %v81_v60  ;;  %v90_v2 = vrot.slane %v77_v61, %v89_v62  ;;  %v86_v3 = vrot.slane %v77_v61, %v85_v63  ;;  %v94_v4 = vrot.slane %v77_v61, %v93_v0  ;;  %v480_v19 = vld [vmem:[%s833_s4] ss:$0 sm:$0xff] }
  0x55   :  { %618 = vmatpush3.bf16.msra.mxu1 %v617_v25  ;;  %588 = vmatprep.subr.bf16.mxu0 %v587_v26 }
  0x56   :  { %620 = vmatprep.subr.bf16.mxu1 %v619_v30 }
  0x58   :  { %590 = vmatpush3.bf16.msra.mxu0 %v589_v36 }
  0x59   :  { %622 = vmatpush3.bf16.msra.mxu1 %v621_v37  ;;  %592 = vmatprep.subr.bf16.mxu0 %v591_v38 }
  0x5a   :  { %624 = vmatprep.subr.bf16.mxu1 %v623_v39 }
  0x5c   :  { %594 = vmatpush3.bf16.msra.mxu0 %v593_v43 }
  0x5d   :  { %626 = vmatpush3.bf16.msra.mxu1 %v625_v45  ;;  %596 = vmatprep.subr.bf16.mxu0 %v595_v49 }
  0x5e   :  { %628 = vmatprep.subr.bf16.mxu1 %v627_v53 }
  0x60   :  { %598 = vmatpush3.bf16.msra.mxu0 %v597_v54 }
  0x61   :  { %630 = vmatpush3.bf16.msra.mxu1 %v629_v57 }
 0x116   :  { %v169_v5 = vpop.f32.mrb[0].mxu0 }
 0x117   :  { %v170_v6 = vadd.f32 %v169_v5, %v82_v1  ;;  %v240_v7 = vpop.f32.mrb[0].mxu1  ;;  %v171_v8 = vpop.f32.mrb[1].mxu0 }
 0x118   :  { %v241_v9 = vadd.f32 %v240_v7, %v90_v2  ;;  %v172_v10 = vadd.f32 %v171_v8, %v86_v3  ;;  %v242_v11 = vpop.f32.mrb[1].mxu1 }
 0x119   :  { %v243_v12 = vadd.f32 %v242_v11, %v94_v4  ;;  %v245_v15 = vmax.f32 %v170_v6, 0.0 }
 0x11a   :  { %v247_v13 = vmax.f32 %v241_v9, 0.0  ;;  %v246_v14 = vmax.f32 %v172_v10, 0.0 }
 0x11b   :  { %v248_v16 = vmax.f32 %v243_v12, 0.0 }
 0x11c   :  { %384 = vmatprep.mubr.f32.mxu0 %v246_v14 }
 0x11d   :  { %454 = vmatprep.mubr.f32.mxu1 %v248_v16  ;;  %385 = vmatmul.mubr.f32.vlgmr.msra.gmra.mrb[2].mxu0 %v245_v15 }
 0x11e   :  { %455 = vmatmul.mubr.f32.vlgmr.msra.gmra.mrb[2].mxu1 %v247_v13 }
 0x1f0   :  { %v513_v17 = vpop.f32.mrb[2].mxu0 }
 0x1f1   :  { %v548_v18 = vpop.f32.mrb[2].mxu1  ;;  %v514_v20 = vpop.f32.mrb[3].mxu0 }
 0x1f2   :  { %v515_v21 = vadd.f32 %v514_v20, %v513_v17  ;;  %v549_v22 = vpop.f32.mrb[3].mxu1 }
 0x1f3   :  { %v550_v23 = vadd.f32 %v549_v22, %v548_v18 }
 0x1f4   :  { %v387_v24 = vadd.f32 %v515_v21, %v480_v19 }
 0x1f6   :  { %v457_v25 = vadd.f32 %v550_v23, %v387_v24 }
 0x1f8   :  { %v460_v26 = vmax.f32 %v457_v25, 0.0 }
 0x1fa   :  { %461 = vst [vmem:[#allocation8] sm:$0xff] %v460_v26 }
 0x1fb   :  { %717 = shalt.err (!%p714_p0)
}
 0x1fc   :  { %s718_s12 = scalar_lea.hbm %s834_s5, 128 }
 0x1fd   :  { %p719_p1 = scmp.ne.s32.totalorder %s834_s5, %s718_s12  ;;  %p722_p2 = scmp.lt.u32.totalorder %s718_s12, %s834_s5 }
 0x1ff   :  { %p724_p3 = pnand %p722_p2, %p719_p1 }
 0x201   :  { %727 = shalt.err (!%p724_p3)
}
 0x202   :  { %471 = dma.vmem_to_hbm [thread:$0]  %s469_s9, 128, %s834_s5, [#allocation4]  }
 0x203   :  { %732 = dma.done.wait [#allocation4], 128  }
 0x204   :  { %733 = vsyncadd [#allocation4], 4294967168 }
 0x205   :  { %475 = vsyncpa [#allocation3], 1 }
 0x206   :  { %476 = vsyncpa [#allocation6], 1 }
 0x207   :  { %477 = vsyncpa [#allocation4], 1 }

</bundles_post_ra>
